<compile_context>
chip_gen: v7x
topology: tpu7x:2x2x1
jax: 0.10.0
libtpu: 0.0.40
codegen_flags: <defaults>
</compile_context>

<pallas_src>
import functools

import numpy as np
import jax
import jax.numpy as jnp
from jax import lax
from jax.experimental import pallas as pl
from jax.experimental.pallas import tpu as pltpu


def _infonce_rows_kernel(sim_ref, out_ref, *, b, half, inv_t, block_rows):
    """Per-row InfoNCE terms for one (block_rows, b) tile of the sim matrix."""
    step = pl.program_id(0)

    a = sim_ref[...].astype(jnp.float32) * inv_t              # (tr, b)
    tr, bc = a.shape

    # Cheap 1-D iotas; only the two compares below touch the full tile.
    r = lax.broadcasted_iota(jnp.int32, (tr, 1), 0) + step * block_rows  # (tr,1)
    c = lax.broadcasted_iota(jnp.int32, (1, bc), 1)                      # (1,bc)
    pc = r + half
    pos_col = jnp.where(pc >= b, pc - b, pc)                  # (i + b//2) % b

    # Positive logit per row (raw, pre-exp).
    pos_logit = jnp.sum(jnp.where(c == pos_col, a, 0.0), axis=1, keepdims=True)

    # Fold the diagonal out of the denominator: mask it to -inf so it never
    # enters the row max nor the exp-sum (exp(-inf) == 0).
    a_nd = jnp.where(c == r, -jnp.inf, a)
    m = jnp.max(a_nd, axis=1, keepdims=True)                  # (tr, 1)
    denom = jnp.sum(jnp.exp(a_nd - m), axis=1, keepdims=True) # (tr, 1)

    # -log( e_pos / (rowsum - e_diag) ) == log(denom) + m - a_pos
    term = jnp.log(denom) + m - pos_logit                     # (tr, 1)

    # Ragged last tile: rows >= b hold undefined data; force their term to 0.
    rvalid = r < b
    out_ref[...] = jnp.where(rvalid, term, 0.0)


def scene2scene_infonce_pallas(sim, *, temperature=0.2, max_block_rows=None):
    """Forward pass of scene2scene_infoNCEloss (if_proj=False => proj = id)."""
    b = sim.shape[0]
    assert sim.shape == (b, b), "expects a square [b, b] similarity matrix"

    # Adaptive row-tile: keep the double-buffered input tile under ~12 MiB so
    # it fits every generation's scoped VMEM (v5e 16 MiB default, v7x 64 MiB
    # physical) with headroom, rounded down to a sublane multiple of 8.
    itemsize = jnp.dtype(sim.dtype).itemsize
    budget_bytes = 12 * 1024 * 1024
    max_rows = max(8, (budget_bytes // (2 * b * itemsize)) // 8 * 8)
    if max_block_rows is not None:
        max_rows = min(max_rows, max_block_rows)

    if b <= max_rows:
        block_rows = b                 # whole matrix in one block (grid == 1)
    else:
        block_rows = max_rows          # multiple of 8; last tile may be ragged
    num_tiles = pl.cdiv(b, block_rows)

    kernel = functools.partial(
        _infonce_rows_kernel,
        b=b,
        half=b // 2,
        inv_t=float(1.0 / temperature),
        block_rows=block_rows,
    )

    # Per-row loss terms; each grid step owns its own output rows, so the grid
    # axis is fully parallel (megacore-shardable on v7x).
    terms = pl.pallas_call(
        kernel,
        out_shape=jax.ShapeDtypeStruct((b, 1), jnp.float32),
        grid=(num_tiles,),
        in_specs=[pl.BlockSpec((block_rows, b), lambda i: (i, 0))],
        out_specs=pl.BlockSpec((block_rows, 1), lambda i: (i, 0)),
        compiler_params=pltpu.CompilerParams(
            dimension_semantics=("parallel",),
            vmem_limit_bytes=32 * 1024 * 1024,
        ),
    )(sim)

    return jnp.sum(terms) / jnp.float32(b - 1)


def _reference_loss(sim, temperature):
    """Direct numpy transcription of the PyTorch infoNCEloss (float64)."""
    b = sim.shape[0]
    e = np.exp(sim.astype(np.float64) / temperature)
    sum_2n = e.sum(axis=1)
    l = 0.0
    for i in range(b):
        l -= np.log(e[i, (i + b // 2) % b] / (sum_2n[i] - e[i, i]))
    l /= (b - 1)
    return l


def _make_sim(key, b, d):
    feats = jax.random.normal(key, (b, d), jnp.float32)
    feats = feats / jnp.linalg.norm(feats, axis=1, keepdims=True)
    return feats @ feats.T                     # [b, b] similarity matrix


if __name__ == "__main__":
    key = jax.random.PRNGKey(0)
    k1, k2 = jax.random.split(key, 2)

    # Case 1: b = 2N = 16 views, d = 32 feature dim (single-block path).
    sim1 = _make_sim(k1, 16, 32)
    loss1 = jax.block_until_ready(scene2scene_infonce_pallas(sim1, temperature=0.2))
    ref1 = _reference_loss(np.asarray(sim1), temperature=0.2)
    assert np.isfinite(float(loss1))
    np.testing.assert_allclose(float(loss1), float(ref1), rtol=1e-4, atol=1e-5)

    # Case 2: b = 20, forced 8-row tiles -> 3 parallel grid steps with a
    # ragged last tile (exercises the multi-tile / row-masking path).
    sim2 = _make_sim(k2, 20, 48)
    loss2 = jax.block_until_ready(
        scene2scene_infonce_pallas(sim2, temperature=0.2, max_block_rows=8))
    ref2 = _reference_loss(np.asarray(sim2), temperature=0.2)
    assert np.isfinite(float(loss2))
    np.testing.assert_allclose(float(loss2), float(ref2), rtol=1e-4, atol=1e-5)

    print("KERNEL_OK")
</pallas_src>

<mosaic_0001>
module attributes {stable_mosaic.version = 11 : i64} {
  func.func @_infonce_rows_kernel(%arg0: i32, %arg1: memref<16x16xf32, #tpu.memory_space<vmem>>, %arg2: memref<16x1xf32, #tpu.memory_space<vmem>>) attributes {dimension_semantics = [#tpu.dimension_semantics<parallel>], iteration_bounds = array<i64: 1>, scalar_prefetch = 0 : i64, scratch_operands = 0 : i64, tpu.core_type = #tpu.core_type<tc>, window_params = [{transform_indices = @transform_0, window_bounds = array<i64: 16, 16>}, {transform_indices = @transform_1, window_bounds = array<i64: 16, 1>}]} {
    %c0 = arith.constant 0 : index
    %c0_0 = arith.constant 0 : index
    %0 = vector.load %arg1[%c0, %c0_0] : memref<16x16xf32, #tpu.memory_space<vmem>>, vector<16x16xf32>
    %cst = arith.constant 5.000000e+00 : f32
    %1 = vector.broadcast %cst : f32 to vector<16x16xf32>
    %2 = arith.mulf %0, %1 : vector<16x16xf32>
    %3 = tpu.iota {dimensions = array<i32: 0>} : vector<16x1xi32>
    %c16_i32 = arith.constant 16 : i32
    %4 = arith.muli %arg0, %c16_i32 : i32
    %5 = vector.broadcast %4 : i32 to vector<16x1xi32>
    %6 = arith.addi %3, %5 : vector<16x1xi32>
    %7 = tpu.iota {dimensions = array<i32: 1>} : vector<1x16xi32>
    %c8_i32 = arith.constant 8 : i32
    %8 = vector.broadcast %c8_i32 : i32 to vector<16x1xi32>
    %9 = arith.addi %6, %8 : vector<16x1xi32>
    %c16_i32_1 = arith.constant 16 : i32
    %10 = vector.broadcast %c16_i32_1 : i32 to vector<16x1xi32>
    %11 = arith.cmpi sge, %9, %10 : vector<16x1xi32>
    %c16_i32_2 = arith.constant 16 : i32
    %12 = vector.broadcast %c16_i32_2 : i32 to vector<16x1xi32>
    %13 = arith.subi %9, %12 : vector<16x1xi32>
    %14 = arith.select %11, %13, %9 : vector<16x1xi1>, vector<16x1xi32>
    %15 = vector.broadcast %7 : vector<1x16xi32> to vector<16x16xi32>
    %16 = vector.broadcast %14 : vector<16x1xi32> to vector<16x16xi32>
    %17 = arith.cmpi eq, %15, %16 : vector<16x16xi32>
    %cst_3 = arith.constant 0.000000e+00 : f32
    %18 = vector.broadcast %cst_3 : f32 to vector<16x16xf32>
    %19 = arith.select %17, %2, %18 : vector<16x16xi1>, vector<16x16xf32>
    %cst_4 = arith.constant dense<0.000000e+00> : vector<16xf32>
    %20 = vector.multi_reduction <add>, %19, %cst_4 [1] : vector<16x16xf32> to vector<16xf32>
    %21 = vector.shape_cast %20 : vector<16xf32> to vector<16x1xf32>
    %22 = vector.broadcast %7 : vector<1x16xi32> to vector<16x16xi32>
    %23 = vector.broadcast %6 : vector<16x1xi32> to vector<16x16xi32>
    %24 = arith.cmpi eq, %22, %23 : vector<16x16xi32>
    %cst_5 = arith.constant 0xFF800000 : f32
    %25 = vector.broadcast %cst_5 : f32 to vector<16x16xf32>
    %26 = arith.select %24, %25, %2 : vector<16x16xi1>, vector<16x16xf32>
    %cst_6 = arith.constant dense<0xFF800000> : vector<16xf32>
    %27 = vector.multi_reduction <maximumf>, %26, %cst_6 [1] : vector<16x16xf32> to vector<16xf32>
    %28 = vector.shape_cast %27 : vector<16xf32> to vector<16x1xf32>
    %29 = vector.broadcast %28 : vector<16x1xf32> to vector<16x16xf32>
    %30 = arith.subf %26, %29 : vector<16x16xf32>
    %31 = math.exp %30 : vector<16x16xf32>
    %cst_7 = arith.constant dense<0.000000e+00> : vector<16xf32>
    %32 = vector.multi_reduction <add>, %31, %cst_7 [1] : vector<16x16xf32> to vector<16xf32>
    %33 = vector.shape_cast %32 : vector<16xf32> to vector<16x1xf32>
    %34 = math.log %33 : vector<16x1xf32>
    %35 = arith.addf %34, %28 : vector<16x1xf32>
    %36 = arith.subf %35, %21 : vector<16x1xf32>
    %c16_i32_8 = arith.constant 16 : i32
    %37 = vector.broadcast %c16_i32_8 : i32 to vector<16x1xi32>
    %38 = arith.cmpi slt, %6, %37 : vector<16x1xi32>
    %cst_9 = arith.constant 0.000000e+00 : f32
    %39 = vector.broadcast %cst_9 : f32 to vector<16x1xf32>
    %40 = arith.select %38, %36, %39 : vector<16x1xi1>, vector<16x1xf32>
    %c0_10 = arith.constant 0 : index
    %c0_11 = arith.constant 0 : index
    %41 = vector.load %arg2[%c0_10, %c0_11] : memref<16x1xf32, #tpu.memory_space<vmem>>, vector<16x1xf32>
    tpu.vector_store %arg2[%c0_10, %c0_11], %40 {strides = array<i32>} : memref<16x1xf32, #tpu.memory_space<vmem>>, vector<16x1xf32>,
    return
  }
  func.func @transform_0(%arg0: i32) -> (i32, i32) {
    %c0_i32 = arith.constant 0 : i32
    %c0_i32_0 = arith.constant 0 : i32
    return %arg0, %c0_i32 : i32, i32
  }
  func.func @transform_1(%arg0: i32) -> (i32, i32) {
    %c0_i32 = arith.constant 0 : i32
    %c0_i32_0 = arith.constant 0 : i32
    return %arg0, %c0_i32 : i32, i32
  }
}

</mosaic_0001>

<bundles_post_ra>
// kernel: tpu_custom_call.1
= control target key start
LH: loop header
LB: loop body
LE: loop exit
PB: predicated region body
PF: predicated region fallthrough
CT: control target
= control target key end

     0   :  { %6 = vsyncpa [#allocation3], 0  ;;  %s133_s6 = smov [#allocation2]   ;;  %s170_s0 = inlined_call_operand.hbm [shape: f32[16,16], index: 0, kind: input, shape index: {}]   ;;  %s171_s1 = inlined_call_operand.vmem [shape: f32[16,1], index: 1, kind: output, shape index: {}]  }
   0x1   :  { %s12_s7 = sshll.u32 %s133_s6, 4  ;;  %s109_s10 = scalar_lea.hbm %s170_s0, 256  ;;  %s13_s7 = int_to_ptr.vmem [resolvable:$true] %s12_s7 }
   0x2   :  { %p110_p0 = scmp.ne.s32.totalorder %s170_s0, %s109_s10  ;;  %p113_p1 = scmp.lt.u32.totalorder %s109_s10, %s170_s0 }
   0x4   :  { %p115_p2 = pnand %p113_p1, %p110_p0 }
   0x6   :  { %118 = shalt.err (!%p115_p2)
}
   0x7   :  { %s119_s15 = scalar_lea.vmem %s13_s7, 256  ;;  %p124_p4 = scmp.lt.s32.totalorder %s13_s7, %s13_s7 }
   0x8   :  { %p120_p3 = scmp.ne.s32.totalorder %s13_s7, %s119_s15  ;;  %p125_p5 = scmp.lt.s32.totalorder %s119_s15, %s119_s15 }
   0xa   :  { %p126_p6 = por %p125_p5, %p124_p4 }
   0xc   :  { %p127_p7 = pnand %p126_p6, %p120_p3 }
   0xe   :  { %130 = shalt.err (!%p127_p7)
}
   0xf   :  { %s134_s16 = smov 128   ;;  %s135_s17 = smov 8  }
  0x10   :  { %18 = dma.hbm_to_vmem [thread:$0]  %s170_s0, 256, %s13_s7, [#allocation3], %s134_s16, %s134_s16, %s135_s17  }
  0x11   :  { %131 = dma.done.wait [#allocation3], 256  }
  0x12   :  { %132 = vsyncadd [#allocation3], 4294967040  ;;  %v26_v0 = vlaneseq  ;;  %v22_v4 = vld [vmem:[#allocation2] sm:$0xff]  ;;  %v23_v5 = vld [vmem:[#allocation2 + $0x8] sm:$0xff]  ;;  %vm47_vm2 = vcmask 130048   ;;  %vm88_vm4 = vcmask 7168  }
  0x13   :  { %v24_v6 = vmul.f32 5.0, %v22_v4  ;;  %v25_v7 = vmul.f32 5.0, %v23_v5 }
  0x14   :  { %v27_v1 = vshrl.u32 %v26_v0, 7  ;;  %v34_v2 = vand.u32 127, %v26_v0 }
  0x16   :  { %v28_v3 = vadd.s32 8, %v27_v1  ;;  %vm54_vm0 = vcmp.eq.s32.totalorder %v34_v2, %v27_v1 }
  0x17   :  { %v56_v8 = vsel %vm54_vm0, -inf, %v24_v6 }
  0x18   :  { %vm43_vm1 = vcmp.eq.s32.totalorder %v34_v2, %v28_v3  ;;  %v58_v10 = vsel %vm47_vm2, %v56_v8, -inf  ;;  %v36_v13 = vadd.s32 8, %v28_v3 }
  0x19   :  { %v57_v9 = vsel %vm43_vm1, -inf, %v25_v7  ;;  %59 = vmax.xlane.f32.xlu0 %v58_v10  ;;  %v45_v12 = vsel %vm43_vm1, %v24_v6, 0.0 }
  0x1a   :  { %v61_v11 = vsel %vm47_vm2, %v57_v9, -inf  ;;  %v48_v14 = vsel %vm47_vm2, %v45_v12, 0.0  ;;  %v97_v15 = vadd.s32 4294967280, %v36_v13 }
  0x1c   :  { %vm44_vm3 = vcmp.eq.s32.totalorder %v34_v2, %v97_v15 }
  0x1d   :  { %62 = vmax.xlane.f32.xlu0 %v61_v11  ;;  %v46_v16 = vsel %vm44_vm3, %v25_v7, 0.0 }
  0x1e   :  { %v51_v27 = vsel %vm47_vm2, %v46_v16, 0.0 }
  0x21   :  { %49 = vadd.xlane.f32.xlu0 %v48_v14 }
  0xa6   :  { %v60_v17 = vpop.xlane.xlu0 %59 }
  0xa7   :  { %v64_v18 = vsub.f32 %v56_v8, %v60_v17 }
  0xa9   :  { %v66_v19 = vmul.f32 1.442695, %v64_v18 }
  0xaa   :  { %v63_v20 = vpop.xlane.xlu0 %62 }
  0xab   :  { %101 = vpow2.f32 %v66_v19  ;;  %v65_v21 = vsub.f32 %v57_v9, %v63_v20 }
  0xad   :  { %v68_v22 = vmul.f32 1.442695, %v65_v21 }
  0xae   :  { %v50_v32 = vpop.xlane.xlu0 %49 }
  0xaf   :  { %103 = vpow2.f32 %v68_v22 }
  0xb5   :  { %v102_v23 = vpop.eup %101 }
  0xb6   :  { %v70_v24 = vsel %vm47_vm2, %v102_v23, 0.0 }
  0xb7   :  { %71 = vadd.xlane.f32.xlu1 %v70_v24 }
  0xb9   :  { %v104_v25 = vpop.eup %103 }
  0xba   :  { %v73_v26 = vsel %vm47_vm2, %v104_v25, 0.0 }
  0xbb   :  { %74 = vadd.xlane.f32.xlu1 %v73_v26 }
  0xbf   :  { %52 = vadd.xlane.f32.xlu1 %v51_v27 }
 0x144   :  { %v72_v28 = vpop.xlane.xlu1 %71 }
 0x145   :  { %105 = vlog2.f32 %v72_v28 }
 0x148   :  { %v75_v29 = vpop.xlane.xlu1 %74 }
 0x149   :  { %107 = vlog2.f32 %v75_v29 }
 0x14c   :  { %v53_v37 = vpop.xlane.xlu1 %52 }
 0x14f   :  { %v106_v30 = vpop.eup %105 }
 0x150   :  { %v77_v31 = vmul.f32 0.6931472, %v106_v30 }
 0x152   :  { %v80_v33 = vadd.f32 %v77_v31, %v60_v17 }
 0x153   :  { %v108_v34 = vpop.eup %107 }
 0x154   :  { %v79_v35 = vmul.f32 0.6931472, %v108_v34  ;;  %v82_v36 = vsub.f32 %v80_v33, %v50_v32 }
 0x156   :  { %89 = vst.msk [vmem:[%s171_s1] sm:$0xff] %vm88_vm4, %v82_v36  ;;  %v81_v38 = vadd.f32 %v79_v35, %v63_v20 }
 0x158   :  { %v83_v39 = vsub.f32 %v81_v38, %v53_v37 }
 0x15a   :  { %90 = vst.msk [vmem:[%s171_s1 + $0x8] sm:$0xff] %vm88_vm4, %v83_v39 }
 0x15b   :  { %95 = vsyncpa [#allocation3], 1 }

</bundles_post_ra>
